<compile_context>
chip_gen: v7x
topology: tpu7x:2x2x1
jax: 0.10.0
libtpu: 0.0.40
codegen_flags: <defaults>
</compile_context>

<pallas_src>
import math
import functools

import jax
import jax.numpy as jnp
from jax import lax
from jax.experimental import pallas as pl
from jax.experimental.pallas import tpu as pltpu


def _mhsa_kernel(xq_ref, xkv_ref, wq_ref, wkv_ref, bq_ref, bkv_ref, o_ref, *,
                 head_count, head_dim):
    TQ, D = xq_ref.shape            # query-tile rows (batch dim squeezed away)
    S = xkv_ref.shape[0]            # full sequence rows for K/V

    # Projections: bf16 operands on the MXU, f32 accumulation, f32 bias add.
    q = jnp.dot(xq_ref[...], wq_ref[...],
                preferred_element_type=jnp.float32) + bq_ref[...]        # (TQ, D)
    kv = jnp.dot(xkv_ref[...], wkv_ref[...],
                 preferred_element_type=jnp.float32) + bkv_ref[...]      # (S, 2D)
    k = kv[:, :D]                                                        # (S, D)
    v = kv[:, D:]                                                        # (S, D)

    scale = 1.0 / math.sqrt(head_dim)

    # Static per-head slices -> true per-head MXU matmuls (contract head_dim,
    # not D).  head_count is small & static here, so the loop is unrolled.
    outs = []
    for h in range(head_count):
        lo, hi = h * head_dim, (h + 1) * head_dim
        qh = q[:, lo:hi].astype(jnp.bfloat16)    # (TQ, hd)
        kh = k[:, lo:hi].astype(jnp.bfloat16)    # (S, hd)
        vh = v[:, lo:hi].astype(jnp.bfloat16)    # (S, hd)

        # (TQ, hd) x (S, hd) contracting the last axes (no explicit .T).
        scores = lax.dot_general(
            qh, kh, (((1,), (1,)), ((), ())),
            preferred_element_type=jnp.float32) * scale                  # (TQ, S)

        # Numerically-stable softmax, all in f32; exact divide.
        scores = scores - jnp.max(scores, axis=-1, keepdims=True)
        p = jnp.exp(scores)
        p = p / jnp.sum(p, axis=-1, keepdims=True)

        outs.append(jnp.dot(p.astype(jnp.bfloat16), vh,
                            preferred_element_type=jnp.float32))         # (TQ, hd)

    o_ref[...] = jnp.concatenate(outs, axis=-1).astype(o_ref.dtype)      # (TQ, D)


def _resident_spec(block_shape, index_map):
    """Constant-index (weight/bias) block: request a single pipeline buffer."""
    buffered = getattr(pl, "Buffered", None)
    if buffered is not None:
        try:
            return pl.BlockSpec(block_shape, index_map, pipeline_mode=buffered(1))
        except TypeError:
            pass
    return pl.BlockSpec(block_shape, index_map)


def multi_head_self_attention(x, wq, wk, wv, bq, bk, bv, *, head_count,
                              q_tile=128, matmul_dtype=jnp.bfloat16):
    """x: (B, S, D); wq/wk/wv: (D, D) pre-transposed; bq/bk/bv: (1, D)."""
    B, S, D = x.shape
    assert D % head_count == 0
    head_dim = D // head_count

    tq = min(q_tile, S)
    assert S % tq == 0, "TODO(synk): ragged last query tile not handled"
    num_q_tiles = S // tq

    # Host-side fusion + bf16 cast of the MXU operands (f32 biases, f32 output).
    x_m = x.astype(matmul_dtype)
    wq_m = wq.astype(matmul_dtype)                                   # (D, D)
    wkv_m = jnp.concatenate([wk, wv], axis=1).astype(matmul_dtype)   # (D, 2D)
    bkv = jnp.concatenate([bk, bv], axis=1)                          # (1, 2D) f32

    kernel = functools.partial(_mhsa_kernel,
                               head_count=head_count, head_dim=head_dim)

    return pl.pallas_call(
        kernel,
        out_shape=jax.ShapeDtypeStruct((B, S, D), x.dtype),
        grid_spec=pltpu.PrefetchScalarGridSpec(
            num_scalar_prefetch=0,
            grid=(B, num_q_tiles),
            in_specs=[
                # query rows for this tile (batch dim squeezed -> (tq, D))
                pl.BlockSpec((None, tq, D), lambda b, qi: (b, qi, 0)),
                # full sequence rows for K/V projection -> (S, D)
                pl.BlockSpec((None, S, D), lambda b, qi: (b, 0, 0)),
                _resident_spec((D, D), lambda b, qi: (0, 0)),          # Wq
                _resident_spec((D, 2 * D), lambda b, qi: (0, 0)),      # Wkv fused
                _resident_spec((1, D), lambda b, qi: (0, 0)),          # bq
                _resident_spec((1, 2 * D), lambda b, qi: (0, 0)),      # bkv fused
            ],
            out_specs=pl.BlockSpec((None, tq, D), lambda b, qi: (b, qi, 0)),
        ),
        compiler_params=pltpu.CompilerParams(
            # Both axes independent: v7x's two TensorCores split B x q-tiles;
            # harmless serial loop on single-TC v5e/v6e.
            dimension_semantics=("parallel", "parallel"),
            # Explicit VMEM budget; fits default scoped limits on v6e/v7x and
            # physical limits everywhere (v7x: 64 MiB physical).
            vmem_limit_bytes=32 * 1024 * 1024,
        ),
    )(x_m, x_m, wq_m, wkv_m, bq, bkv)


def _reference(x, wq, wk, wv, bq, bk, bv, head_count):
    """Pure-JAX f32 reference mirroring the PyTorch module semantics."""
    B, S, D = x.shape
    hd = D // head_count
    q = x @ wq + bq
    k = x @ wk + bk
    v = x @ wv + bv

    def split(t):  # (B, S, D) -> (B, H, S, hd)
        return t.reshape(B, S, head_count, hd).transpose(0, 2, 1, 3)

    qh, kh, vh = split(q), split(k), split(v)
    scores = jnp.einsum("bhqd,bhkd->bhqk", qh, kh) / math.sqrt(hd)
    attn = jax.nn.softmax(scores, axis=-1)
    out = jnp.einsum("bhqk,bhkd->bhqd", attn, vh)
    return out.transpose(0, 2, 1, 3).reshape(B, S, D)


if __name__ == "__main__":
    # Small shapes consistent with the module: batch=2, seq=8, token dim=32, 4 heads.
    B, S, D = 2, 8, 32
    head_count = 4

    key = jax.random.PRNGKey(0)
    kx, kwq, kwk, kwv, kbq, kbk, kbv = jax.random.split(key, 7)

    # Deterministic parameter init mimicking nn.Linear (uniform +-1/sqrt(in_features)).
    bound = 1.0 / math.sqrt(D)
    x = jax.random.normal(kx, (B, S, D), dtype=jnp.float32)
    wq = jax.random.uniform(kwq, (D, D), jnp.float32, -bound, bound)
    wk = jax.random.uniform(kwk, (D, D), jnp.float32, -bound, bound)
    wv = jax.random.uniform(kwv, (D, D), jnp.float32, -bound, bound)
    bq = jax.random.uniform(kbq, (1, D), jnp.float32, -bound, bound)
    bk = jax.random.uniform(kbk, (1, D), jnp.float32, -bound, bound)
    bv = jax.random.uniform(kbv, (1, D), jnp.float32, -bound, bound)

    out = multi_head_self_attention(x, wq, wk, wv, bq, bk, bv, head_count=head_count)
    out = jax.block_until_ready(out)

    ref = _reference(x, wq, wk, wv, bq, bk, bv, head_count)
    assert out.shape == (B, S, D)
    # Tolerance reflects bf16 MXU operands (f32 accumulation / f32 softmax).
    assert jnp.allclose(out, ref, atol=2e-2, rtol=2e-2), "mismatch vs reference"

    print("KERNEL_OK")
</pallas_src>

<mosaic_0001>
module attributes {stable_mosaic.version = 11 : i64} {
  func.func @_mhsa_kernel(%arg0: i32, %arg1: i32, %arg2: memref<1x8x32xbf16, #tpu.memory_space<vmem>>, %arg3: memref<1x8x32xbf16, #tpu.memory_space<vmem>>, %arg4: memref<32x32xbf16, #tpu.memory_space<vmem>>, %arg5: memref<32x64xbf16, #tpu.memory_space<vmem>>, %arg6: memref<1x32xf32, #tpu.memory_space<vmem>>, %arg7: memref<1x64xf32, #tpu.memory_space<vmem>>, %arg8: memref<1x8x32xf32, #tpu.memory_space<vmem>>) attributes {dimension_semantics = [#tpu.dimension_semantics<parallel>, #tpu.dimension_semantics<parallel>], iteration_bounds = array<i64: 2, 1>, scalar_prefetch = 0 : i64, scratch_operands = 0 : i64, tpu.core_type = #tpu.core_type<tc>, window_params = [{transform_indices = @transform_0, window_bounds = array<i64: 1, 8, 32>}, {transform_indices = @transform_1, window_bounds = array<i64: 1, 8, 32>}, {pipeline_mode = #tpu.pipeline_mode<synchronous>, transform_indices = @transform_2, window_bounds = array<i64: 32, 32>}, {pipeline_mode = #tpu.pipeline_mode<synchronous>, transform_indices = @transform_3, window_bounds = array<i64: 32, 64>}, {pipeline_mode = #tpu.pipeline_mode<synchronous>, transform_indices = @transform_4, window_bounds = array<i64: 1, 32>}, {pipeline_mode = #tpu.pipeline_mode<synchronous>, transform_indices = @transform_5, window_bounds = array<i64: 1, 64>}, {transform_indices = @transform_6, window_bounds = array<i64: 1, 8, 32>}]} {
    %c0 = arith.constant 0 : index
    %c0_0 = arith.constant 0 : index
    %c0_1 = arith.constant 0 : index
    %0 = vector.load %arg2[%c0, %c0_0, %c0_1] : memref<1x8x32xbf16, #tpu.memory_space<vmem>>, vector<1x8x32xbf16>
    %1 = vector.shape_cast %0 : vector<1x8x32xbf16> to vector<8x32xbf16>
    %c0_2 = arith.constant 0 : index
    %c0_3 = arith.constant 0 : index
    %2 = vector.load %arg4[%c0_2, %c0_3] : memref<32x32xbf16, #tpu.memory_space<vmem>>, vector<32x32xbf16>
    %cst = arith.constant dense<0.000000e+00> : vector<8x32xf32>
    %3 = tpu.matmul %1, %2, %cst {dimension_numbers = #tpu.dot_dimension_numbers<[1], [0], [0], [1], [0, 0, 1, 1], [], []>} : vector<8x32xbf16>, vector<32x32xbf16>, vector<8x32xf32> -> vector<8x32xf32>
    %c0_4 = arith.constant 0 : index
    %c0_5 = arith.constant 0 : index
    %4 = vector.load %arg6[%c0_4, %c0_5] : memref<1x32xf32, #tpu.memory_space<vmem>>, vector<1x32xf32>
    %5 = vector.broadcast %4 : vector<1x32xf32> to vector<8x32xf32>
    %6 = arith.addf %3, %5 : vector<8x32xf32>
    %c0_6 = arith.constant 0 : index
    %c0_7 = arith.constant 0 : index
    %c0_8 = arith.constant 0 : index
    %7 = vector.load %arg3[%c0_6, %c0_7, %c0_8] : memref<1x8x32xbf16, #tpu.memory_space<vmem>>, vector<1x8x32xbf16>
    %8 = vector.shape_cast %7 : vector<1x8x32xbf16> to vector<8x32xbf16>
    %c0_9 = arith.constant 0 : index
    %c0_10 = arith.constant 0 : index
    %9 = vector.load %arg5[%c0_9, %c0_10] : memref<32x64xbf16, #tpu.memory_space<vmem>>, vector<32x64xbf16>
    %cst_11 = arith.constant dense<0.000000e+00> : vector<8x64xf32>
    %10 = tpu.matmul %8, %9, %cst_11 {dimension_numbers = #tpu.dot_dimension_numbers<[1], [0], [0], [1], [0, 0, 1, 1], [], []>} : vector<8x32xbf16>, vector<32x64xbf16>, vector<8x64xf32> -> vector<8x64xf32>
    %c0_12 = arith.constant 0 : index
    %c0_13 = arith.constant 0 : index
    %11 = vector.load %arg7[%c0_12, %c0_13] : memref<1x64xf32, #tpu.memory_space<vmem>>, vector<1x64xf32>
    %12 = vector.broadcast %11 : vector<1x64xf32> to vector<8x64xf32>
    %13 = arith.addf %10, %12 : vector<8x64xf32>
    %14 = vector.extract_strided_slice %13 {offsets = [0, 0], sizes = [8, 32], strides = [1, 1]} : vector<8x64xf32> to vector<8x32xf32>
    %15 = vector.extract_strided_slice %13 {offsets = [0, 32], sizes = [8, 32], strides = [1, 1]} : vector<8x64xf32> to vector<8x32xf32>
    %16 = vector.extract_strided_slice %6 {offsets = [0, 0], sizes = [8, 8], strides = [1, 1]} : vector<8x32xf32> to vector<8x8xf32>
    %17 = arith.truncf %16 : vector<8x8xf32> to vector<8x8xbf16>
    %18 = vector.extract_strided_slice %14 {offsets = [0, 0], sizes = [8, 8], strides = [1, 1]} : vector<8x32xf32> to vector<8x8xf32>
    %19 = arith.truncf %18 : vector<8x8xf32> to vector<8x8xbf16>
    %20 = vector.extract_strided_slice %15 {offsets = [0, 0], sizes = [8, 8], strides = [1, 1]} : vector<8x32xf32> to vector<8x8xf32>
    %21 = arith.truncf %20 : vector<8x8xf32> to vector<8x8xbf16>
    %cst_14 = arith.constant dense<0.000000e+00> : vector<8x8xf32>
    %22 = tpu.matmul %17, %19, %cst_14 {dimension_numbers = #tpu.dot_dimension_numbers<[1], [1], [0], [0], [0, 0, 1, 0], [], []>} : vector<8x8xbf16>, vector<8x8xbf16>, vector<8x8xf32> -> vector<8x8xf32>
    %cst_15 = arith.constant 0.353553385 : f32
    %23 = vector.broadcast %cst_15 : f32 to vector<8x8xf32>
    %24 = arith.mulf %22, %23 : vector<8x8xf32>
    %cst_16 = arith.constant dense<0xFF800000> : vector<8xf32>
    %25 = vector.multi_reduction <maximumf>, %24, %cst_16 [1] : vector<8x8xf32> to vector<8xf32>
    %26 = vector.shape_cast %25 : vector<8xf32> to vector<8x1xf32>
    %27 = vector.broadcast %26 : vector<8x1xf32> to vector<8x8xf32>
    %28 = arith.subf %24, %27 : vector<8x8xf32>
    %29 = math.exp %28 : vector<8x8xf32>
    %cst_17 = arith.constant dense<0.000000e+00> : vector<8xf32>
    %30 = vector.multi_reduction <add>, %29, %cst_17 [1] : vector<8x8xf32> to vector<8xf32>
    %31 = vector.shape_cast %30 : vector<8xf32> to vector<8x1xf32>
    %32 = vector.broadcast %31 : vector<8x1xf32> to vector<8x8xf32>
    %33 = arith.divf %29, %32 : vector<8x8xf32>
    %34 = arith.truncf %33 : vector<8x8xf32> to vector<8x8xbf16>
    %cst_18 = arith.constant dense<0.000000e+00> : vector<8x8xf32>
    %35 = tpu.matmul %34, %21, %cst_18 {dimension_numbers = #tpu.dot_dimension_numbers<[1], [0], [0], [1], [0, 0, 1, 1], [], []>} : vector<8x8xbf16>, vector<8x8xbf16>, vector<8x8xf32> -> vector<8x8xf32>
    %36 = vector.extract_strided_slice %6 {offsets = [0, 8], sizes = [8, 8], strides = [1, 1]} : vector<8x32xf32> to vector<8x8xf32>
    %37 = arith.truncf %36 : vector<8x8xf32> to vector<8x8xbf16>
    %38 = vector.extract_strided_slice %14 {offsets = [0, 8], sizes = [8, 8], strides = [1, 1]} : vector<8x32xf32> to vector<8x8xf32>
    %39 = arith.truncf %38 : vector<8x8xf32> to vector<8x8xbf16>
    %40 = vector.extract_strided_slice %15 {offsets = [0, 8], sizes = [8, 8], strides = [1, 1]} : vector<8x32xf32> to vector<8x8xf32>
    %41 = arith.truncf %40 : vector<8x8xf32> to vector<8x8xbf16>
    %cst_19 = arith.constant dense<0.000000e+00> : vector<8x8xf32>
    %42 = tpu.matmul %37, %39, %cst_19 {dimension_numbers = #tpu.dot_dimension_numbers<[1], [1], [0], [0], [0, 0, 1, 0], [], []>} : vector<8x8xbf16>, vector<8x8xbf16>, vector<8x8xf32> -> vector<8x8xf32>
    %cst_20 = arith.constant 0.353553385 : f32
    %43 = vector.broadcast %cst_20 : f32 to vector<8x8xf32>
    %44 = arith.mulf %42, %43 : vector<8x8xf32>
    %cst_21 = arith.constant dense<0xFF800000> : vector<8xf32>
    %45 = vector.multi_reduction <maximumf>, %44, %cst_21 [1] : vector<8x8xf32> to vector<8xf32>
    %46 = vector.shape_cast %45 : vector<8xf32> to vector<8x1xf32>
    %47 = vector.broadcast %46 : vector<8x1xf32> to vector<8x8xf32>
    %48 = arith.subf %44, %47 : vector<8x8xf32>
    %49 = math.exp %48 : vector<8x8xf32>
    %cst_22 = arith.constant dense<0.000000e+00> : vector<8xf32>
    %50 = vector.multi_reduction <add>, %49, %cst_22 [1] : vector<8x8xf32> to vector<8xf32>
    %51 = vector.shape_cast %50 : vector<8xf32> to vector<8x1xf32>
    %52 = vector.broadcast %51 : vector<8x1xf32> to vector<8x8xf32>
    %53 = arith.divf %49, %52 : vector<8x8xf32>
    %54 = arith.truncf %53 : vector<8x8xf32> to vector<8x8xbf16>
    %cst_23 = arith.constant dense<0.000000e+00> : vector<8x8xf32>
    %55 = tpu.matmul %54, %41, %cst_23 {dimension_numbers = #tpu.dot_dimension_numbers<[1], [0], [0], [1], [0, 0, 1, 1], [], []>} : vector<8x8xbf16>, vector<8x8xbf16>, vector<8x8xf32> -> vector<8x8xf32>
    %56 = vector.extract_strided_slice %6 {offsets = [0, 16], sizes = [8, 8], strides = [1, 1]} : vector<8x32xf32> to vector<8x8xf32>
    %57 = arith.truncf %56 : vector<8x8xf32> to vector<8x8xbf16>
    %58 = vector.extract_strided_slice %14 {offsets = [0, 16], sizes = [8, 8], strides = [1, 1]} : vector<8x32xf32> to vector<8x8xf32>
    %59 = arith.truncf %58 : vector<8x8xf32> to vector<8x8xbf16>
    %60 = vector.extract_strided_slice %15 {offsets = [0, 16], sizes = [8, 8], strides = [1, 1]} : vector<8x32xf32> to vector<8x8xf32>
    %61 = arith.truncf %60 : vector<8x8xf32> to vector<8x8xbf16>
    %cst_24 = arith.constant dense<0.000000e+00> : vector<8x8xf32>
    %62 = tpu.matmul %57, %59, %cst_24 {dimension_numbers = #tpu.dot_dimension_numbers<[1], [1], [0], [0], [0, 0, 1, 0], [], []>} : vector<8x8xbf16>, vector<8x8xbf16>, vector<8x8xf32> -> vector<8x8xf32>
    %cst_25 = arith.constant 0.353553385 : f32
    %63 = vector.broadcast %cst_25 : f32 to vector<8x8xf32>
    %64 = arith.mulf %62, %63 : vector<8x8xf32>
    %cst_26 = arith.constant dense<0xFF800000> : vector<8xf32>
    %65 = vector.multi_reduction <maximumf>, %64, %cst_26 [1] : vector<8x8xf32> to vector<8xf32>
    %66 = vector.shape_cast %65 : vector<8xf32> to vector<8x1xf32>
    %67 = vector.broadcast %66 : vector<8x1xf32> to vector<8x8xf32>
    %68 = arith.subf %64, %67 : vector<8x8xf32>
    %69 = math.exp %68 : vector<8x8xf32>
    %cst_27 = arith.constant dense<0.000000e+00> : vector<8xf32>
    %70 = vector.multi_reduction <add>, %69, %cst_27 [1] : vector<8x8xf32> to vector<8xf32>
    %71 = vector.shape_cast %70 : vector<8xf32> to vector<8x1xf32>
    %72 = vector.broadcast %71 : vector<8x1xf32> to vector<8x8xf32>
    %73 = arith.divf %69, %72 : vector<8x8xf32>
    %74 = arith.truncf %73 : vector<8x8xf32> to vector<8x8xbf16>
    %cst_28 = arith.constant dense<0.000000e+00> : vector<8x8xf32>
    %75 = tpu.matmul %74, %61, %cst_28 {dimension_numbers = #tpu.dot_dimension_numbers<[1], [0], [0], [1], [0, 0, 1, 1], [], []>} : vector<8x8xbf16>, vector<8x8xbf16>, vector<8x8xf32> -> vector<8x8xf32>
    %76 = vector.extract_strided_slice %6 {offsets = [0, 24], sizes = [8, 8], strides = [1, 1]} : vector<8x32xf32> to vector<8x8xf32>
    %77 = arith.truncf %76 : vector<8x8xf32> to vector<8x8xbf16>
    %78 = vector.extract_strided_slice %14 {offsets = [0, 24], sizes = [8, 8], strides = [1, 1]} : vector<8x32xf32> to vector<8x8xf32>
    %79 = arith.truncf %78 : vector<8x8xf32> to vector<8x8xbf16>
    %80 = vector.extract_strided_slice %15 {offsets = [0, 24], sizes = [8, 8], strides = [1, 1]} : vector<8x32xf32> to vector<8x8xf32>
    %81 = arith.truncf %80 : vector<8x8xf32> to vector<8x8xbf16>
    %cst_29 = arith.constant dense<0.000000e+00> : vector<8x8xf32>
    %82 = tpu.matmul %77, %79, %cst_29 {dimension_numbers = #tpu.dot_dimension_numbers<[1], [1], [0], [0], [0, 0, 1, 0], [], []>} : vector<8x8xbf16>, vector<8x8xbf16>, vector<8x8xf32> -> vector<8x8xf32>
    %cst_30 = arith.constant 0.353553385 : f32
    %83 = vector.broadcast %cst_30 : f32 to vector<8x8xf32>
    %84 = arith.mulf %82, %83 : vector<8x8xf32>
    %cst_31 = arith.constant dense<0xFF800000> : vector<8xf32>
    %85 = vector.multi_reduction <maximumf>, %84, %cst_31 [1] : vector<8x8xf32> to vector<8xf32>
    %86 = vector.shape_cast %85 : vector<8xf32> to vector<8x1xf32>
    %87 = vector.broadcast %86 : vector<8x1xf32> to vector<8x8xf32>
    %88 = arith.subf %84, %87 : vector<8x8xf32>
    %89 = math.exp %88 : vector<8x8xf32>
    %cst_32 = arith.constant dense<0.000000e+00> : vector<8xf32>
    %90 = vector.multi_reduction <add>, %89, %cst_32 [1] : vector<8x8xf32> to vector<8xf32>
    %91 = vector.shape_cast %90 : vector<8xf32> to vector<8x1xf32>
    %92 = vector.broadcast %91 : vector<8x1xf32> to vector<8x8xf32>
    %93 = arith.divf %89, %92 : vector<8x8xf32>
    %94 = arith.truncf %93 : vector<8x8xf32> to vector<8x8xbf16>
    %cst_33 = arith.constant dense<0.000000e+00> : vector<8x8xf32>
    %95 = tpu.matmul %94, %81, %cst_33 {dimension_numbers = #tpu.dot_dimension_numbers<[1], [0], [0], [1], [0, 0, 1, 1], [], []>} : vector<8x8xbf16>, vector<8x8xbf16>, vector<8x8xf32> -> vector<8x8xf32>
    %96 = tpu.concatenate %35, %55, %75, %95 in 1 : vector<8x8xf32>, vector<8x8xf32>, vector<8x8xf32>, vector<8x8xf32> -> vector<8x32xf32>
    %c0_34 = arith.constant 0 : index
    %c0_35 = arith.constant 0 : index
    %c0_36 = arith.constant 0 : index
    %97 = vector.load %arg8[%c0_34, %c0_35, %c0_36] : memref<1x8x32xf32, #tpu.memory_space<vmem>>, vector<1x8x32xf32>
    %98 = vector.shape_cast %97 : vector<1x8x32xf32> to vector<8x32xf32>
    %99 = vector.shape_cast %96 : vector<8x32xf32> to vector<1x8x32xf32>
    tpu.vector_store %arg8[%c0_34, %c0_35, %c0_36], %99 {strides = array<i32>} : memref<1x8x32xf32, #tpu.memory_space<vmem>>, vector<1x8x32xf32>,
    return
  }
  func.func @transform_0(%arg0: i32, %arg1: i32) -> (i32, i32, i32) {
    %c0_i32 = arith.constant 0 : i32
    %c0_i32_0 = arith.constant 0 : i32
    return %arg0, %arg1, %c0_i32 : i32, i32, i32
  }
  func.func @transform_1(%arg0: i32, %arg1: i32) -> (i32, i32, i32) {
    %c0_i32 = arith.constant 0 : i32
    %c0_i32_0 = arith.constant 0 : i32
    %c0_i32_1 = arith.constant 0 : i32
    return %arg0, %c0_i32, %c0_i32_0 : i32, i32, i32
  }
  func.func @transform_2(%arg0: i32, %arg1: i32) -> (i32, i32) {
    %c0_i32 = arith.constant 0 : i32
    %c0_i32_0 = arith.constant 0 : i32
    %c0_i32_1 = arith.constant 0 : i32
    return %c0_i32, %c0_i32_0 : i32, i32
  }
  func.func @transform_3(%arg0: i32, %arg1: i32) -> (i32, i32) {
    %c0_i32 = arith.constant 0 : i32
    %c0_i32_0 = arith.constant 0 : i32
    %c0_i32_1 = arith.constant 0 : i32
    return %c0_i32, %c0_i32_0 : i32, i32
  }
  func.func @transform_4(%arg0: i32, %arg1: i32) -> (i32, i32) {
    %c0_i32 = arith.constant 0 : i32
    %c0_i32_0 = arith.constant 0 : i32
    %c0_i32_1 = arith.constant 0 : i32
    return %c0_i32, %c0_i32_0 : i32, i32
  }
  func.func @transform_5(%arg0: i32, %arg1: i32) -> (i32, i32) {
    %c0_i32 = arith.constant 0 : i32
    %c0_i32_0 = arith.constant 0 : i32
    %c0_i32_1 = arith.constant 0 : i32
    return %c0_i32, %c0_i32_0 : i32, i32
  }
  func.func @transform_6(%arg0: i32, %arg1: i32) -> (i32, i32, i32) {
    %c0_i32 = arith.constant 0 : i32
    %c0_i32_0 = arith.constant 0 : i32
    return %arg0, %arg1, %c0_i32 : i32, i32, i32
  }
}

</mosaic_0001>

<bundles_post_ra>
// kernel: tpu_custom_call.1
= control target key start
LH: loop header
LB: loop body
LE: loop exit
PB: predicated region body
PF: predicated region fallthrough
CT: control target
= control target key end

     0   :  { %s1958_s0 = inlined_call_operand.hbm [shape: bf16[2,8,32], index: 0, kind: input, shape index: {}]   ;;  %s1959_s1 = inlined_call_operand.hbm [shape: bf16[2,8,32], index: 1, kind: input, shape index: {}]   ;;  %s1960_s2 = inlined_call_operand.hbm [shape: bf16[32,32], index: 2, kind: input, shape index: {}]   ;;  %s1961_s3 = inlined_call_operand.hbm [shape: bf16[32,64], index: 3, kind: input, shape index: {}]   ;;  %s1962_s4 = inlined_call_operand.vmem [shape: f32[1,32], index: 4, kind: input, shape index: {}]   ;;  %s1963_s5 = inlined_call_operand.vmem [shape: f32[1,64], index: 5, kind: input, shape index: {}]   ;;  %s1964_s6 = inlined_call_operand.hbm [shape: f32[2,8,32], index: 6, kind: output, shape index: {}]  }
   0x1   :  { %1971 = sst [smem:[#allocation19_spill]] %s1960_s2 }
   0x2   :  { %1972 = sst [smem:[#allocation20_spill]] %s1961_s3 }
   0x3   :  { %11 = vsyncpa [#allocation3], 0 }
   0x4   :  { %13 = vsyncpa [#allocation3 + $0x1], 0 }
   0x5   :  { %14 = vsyncpa [#allocation6], 0 }
   0x6   :  { %16 = vsyncpa [#allocation6 + $0x1], 0 }
   0x7   :  { %17 = vsyncpa [#allocation9], 0 }
   0x8   :  { %18 = vsyncpa [#allocation4], 0 }
   0x9   :  { %20 = vsyncpa [#allocation4 + $0x1], 0  ;;  %s1597_s21 = smov 0   ;;  %s1599_s22 = smov 0  }
   0xa   :  { %s1601_s23 = smov 0   ;;  %s1603_s24 = smov 0  }
   0xb   :  { %s1605_s25 = smov 0   ;;  %s1607_s26 = smov 0  }
   0xc LB: > { %1973 = sst [smem:[#allocation16_spill]] %s1537_s25  ;;  %s1628_s27 = sadd.s32 4294967295, %s1541_s26   ;;  %s1541_s26 = sphi %s1607_s26, %s26_s26   ;;  %s1537_s25 = sphi %s1605_s25, %s1996_s25   ;;  %s1533_s24 = sphi %s1603_s24, %s1995_s24   ;;  %s1529_s23 = sphi %s1601_s23, %s1999_s23   ;;  %s1525_s22 = sphi %s1599_s22, %s1998_s22   ;;  %s1521_s21 = sphi %s1597_s21, %s1997_s21  }
   0xd   : > { %s1088_s28 = sadd.s32 4294967294, %s1541_s26   ;;  %p60_p0 = scmp.ne.s32.totalorder %s1525_s22, %s1521_s21 }
   0xe   : > { %p1965_p1 = scmp.eq.s32.totalorder %s1628_s27, 0  ;;  %p202_p3 = scmp.eq.s32.totalorder %s1088_s28, 1 }
   0xf   : > { %p1089_p5 = scmp.ge.s32.totalorder %s1541_s26, 1  ;;  %p209_p7 = scmp.lt.s32.totalorder %s1541_s26, 3 }
  0x10   : > { %p1637_p4 = por %p1965_p1, %p60_p0  ;;  %p1642_p6 = por %p202_p3, %p60_p0 }
  0x11   : > { %p1647_p8 = pnand %p1089_p5, %p209_p7  ;;  %s1543_s8 = smov [#allocation7]  }
  0x12   : > { %s1974_s29 = scalar_select %p1637_p4, 1, 0 }
  0x13   : > { %s1975_s30 = scalar_select %p1642_p6, 1, 0 }
  0x14   : > { %s1976_s7 = scalar_select %p1647_p8, 1, 0 }
  0x15   : > { %s221_s9 = sshll.u32 %s1543_s8, 4  ;;  %p1223_p9 = pneg %p1647_p8  ;;  %s1651_s9 = int_to_ptr.vmem [resolvable:$true] %s221_s9 }
  0x16   : > { %s1544_s11 = smov [#allocation8]   ;;  %s1978_s2 = sld [smem:[#allocation19_spill]] }
  0x17   : > { %p1658_p11 = pnand %p1223_p9, %p1965_p1  ;;  %s234_s12 = sshll.u32 %s1544_s11, 4  ;;  %s1662_s12 = int_to_ptr.vmem [resolvable:$true] %s234_s12 }
  0x19   : > { %p1333_p13 = pneg %p1658_p11 }
  0x1c   : > { %s1331_s15 = scalar_lea.hbm %s1978_s2, 256 }
  0x1d   : > { %p1332_p12 = scmp.ne.s32.totalorder %s1978_s2, %s1331_s15  ;;  %p1338_p5 = scmp.lt.u32.totalorder %s1331_s15, %s1978_s2 }
  0x1f   : > { %p1334_p0 = pnand %p1333_p13, %p1332_p12 }
  0x21   : > { %p1335_p3 = pneg %p1334_p0 }
  0x23   : > { %p1340_p7 = pnand %p1338_p5, %p1335_p3 }
  0x25   : > { %1343 = shalt.err (!%p1340_p7)
}
  0x26   : > { %s1344_s20 = scalar_lea.vmem %s1651_s9, 256  ;;  %p1352_p2 = scmp.lt.s32.totalorder %s1651_s9, %s1651_s9 }
  0x27   : > { %p1345_p9 = scmp.ne.s32.totalorder %s1651_s9, %s1344_s20  ;;  %p1353_p12 = scmp.lt.s32.totalorder %s1344_s20, %s1344_s20 }
  0x29   : > { %p1347_p10 = pnand %p1345_p9, %p1333_p13  ;;  %p1354_p0 = por %p1353_p12, %p1352_p2 }
  0x2b   : > { %p1348_p1 = pneg %p1347_p10 }
  0x2d   : > { %p1355_p6 = pnand %p1354_p0, %p1348_p1 }
  0x2f   : > { %1358 = shalt.err (!%p1355_p6)
}
  0x30   : > { %s1545_s28 = smov 64   ;;  %s1546_s8 = smov 4  }
  0x31   : > { %1226 = dma.hbm_to_vmem [thread:$0]  (!%p1658_p11), %s1978_s2, 256, %s1651_s9, [#allocation6], %s1545_s28, %s1545_s28, %s1546_s8  }
  0x32   : > { %s1979_s3 = sld [smem:[#allocation20_spill]] }
  0x38   : > { %s1359_s16 = scalar_lea.hbm %s1979_s3, 256 }
  0x39   : > { %p1360_p2 = scmp.ne.s32.totalorder %s1979_s3, %s1359_s16  ;;  %p1366_p10 = scmp.lt.u32.totalorder %s1359_s16, %s1979_s3 }
  0x3b   : > { %p1362_p1 = pnand %p1360_p2, %p1333_p13 }
  0x3d   : > { %p1363_p6 = pneg %p1362_p1 }
  0x3f   : > { %p1368_p3 = pnand %p1366_p10, %p1363_p6 }
  0x41   : > { %1371 = shalt.err (!%p1368_p3)
}
  0x42   : > { %s1372_s9 = scalar_lea.vmem %s1662_s12, 256  ;;  %p1380_p12 = scmp.lt.s32.totalorder %s1662_s12, %s1662_s12 }
  0x43   : > { %p1373_p5 = scmp.ne.s32.totalorder %s1662_s12, %s1372_s9  ;;  %p1381_p0 = scmp.lt.s32.totalorder %s1372_s9, %s1372_s9 }
  0x45   : > { %p1375_p7 = pnand %p1373_p5, %p1333_p13  ;;  %p1382_p2 = por %p1381_p0, %p1380_p12 }
  0x47   : > { %p1376_p9 = pneg %p1375_p7 }
  0x49   : > { %p1383_p1 = pnand %p1382_p2, %p1376_p9 }
  0x4b   : > { %1386 = shalt.err (!%p1383_p1)
}
  0x4c   : > { %1229 = dma.hbm_to_vmem [thread:$0]  (!%p1658_p11), %s1979_s3, 256, %s1662_s12, [#allocation9], %s1545_s28, %s1545_s28, %s1546_s8  }
  0x4d   : > { %s38_s14 = sadd.s32 1, %s1537_s25  ;;  %s47_s15 = sadd.s32 1, %s1529_s23 }
  0x4e   : > { %p40_p13 = scmp.ge.s32.totalorder %s38_s14, 2  ;;  %p54_p6 = scmp.ne.s32.totalorder %s1529_s23, %s1525_s22 }
  0x4f   : > { %p55_p10 = scmp.eq.s32.totalorder %s1541_s26, 0  ;;  %p1243_p3 = scmp.lt.s32.totalorder %s1541_s26, 2 }
  0x50   : > { %s2001_s14 = smov (%p40_p13, %s38_s14), 0  ;;  %p1981_p7 = scmp.eq.s32.totalorder %s1628_s27, 1 }
  0x51   : > { %1980 = sst [smem:[#allocation17_spill]] %s2001_s14  ;;  %p56_p5 = por %p55_p10, %p54_p6 }
  0x52   : > { %p1726_p9 = por %p1981_p7, %p54_p6  ;;  %s42_s16 = ssub.s32 %s1537_s25, %s2001_s14 }
  0x53   : > { %s254_s17 = sand.u32 1, %s1529_s23   ;;  %p45_p12 = scmp.eq.s32.totalorder %s42_s16, 0 }
  0x54   : > { %s1982_s10 = scalar_select %p1726_p9, 1, 0 }
  0x55   : > { %s1733_s12 = sshll.u32 %s254_s17, 2  ;;  %s1094_s28 = sshll.u32 %s1537_s25, 6 }
  0x56   : > { %s1737_s8 = scalar_select %p45_p12, %s1529_s23, %s47_s15  }
  0x57   : > { %s1742_s20 = scalar_lea.hbm %s1958_s0, %s1094_s28  ;;  %s258_s9 = scalar_lea.vmem [#allocation2], %s1733_s12 }
  0x58   : > { %1983 = sst [smem:[#allocation18_spill]] %s1737_s8  ;;  %s266_s11 = sshll.u32 %s258_s9, 4  ;;  %s1751_s11 = int_to_ptr.vmem [resolvable:$true] %s266_s11 }
  0x59   : > { %p1747_p11 = pnand %p1243_p3, %p56_p5  ;;  %s1756_s18 = scalar_lea.hbm %s1959_s1, %s1094_s28 }
  0x5a   : > { %s255_s19 = scalar_lea.sflag [#allocation3], %s254_s17  ;;  %s1387_s2 = scalar_lea.hbm %s1742_s20, 64 }
  0x5b   : > { %p1388_p0 = scmp.ne.s32.totalorder %s1742_s20, %s1387_s2  ;;  %p1389_p2 = pneg %p1747_p11 }
  0x5c   : > { %s1392_s14 = scalar_lea.hbm %s1958_s0, 128  ;;  %p1393_p6 = scmp.lt.u32.totalorder %s1742_s20, %s1958_s0 }
  0x5d   : > { %p1390_p1 = pnand %p1389_p2, %p1388_p0  ;;  %p1394_p10 = scmp.lt.u32.totalorder %s1392_s14, %s1387_s2 }
  0x5e   : > { %p1396_p5 = scmp.lt.u32.totalorder %s1387_s2, %s1742_s20 }
  0x5f   : > { %p1391_p13 = pneg %p1390_p1  ;;  %p1395_p3 = por %p1394_p10, %p1393_p6 }
  0x61   : > { %p1397_p7 = por %p1396_p5, %p1395_p3 }
  0x63   : > { %p1398_p12 = pnand %p1397_p7, %p1391_p13 }
  0x65   : > { %1401 = shalt.err (!%p1398_p12)
}
  0x66   : > { %s1402_s17 = scalar_lea.vmem %s1751_s11, 64  ;;  %s1547_s3 = smov [#allocation2]  }
  0x67   : > { %p1403_p0 = scmp.ne.s32.totalorder %s1751_s11, %s1402_s17  ;;  %s1407_s28 = sshll.u32 %s1547_s3, 4  ;;  %s1408_s28 = int_to_ptr.vmem [resolvable:$false] %s1407_s28 }
  0x68   : > { %s1409_s25 = scalar_lea.vmem %s1408_s28, 128  ;;  %p1410_p4 = scmp.lt.s32.totalorder %s1751_s11, %s1408_s28 }
  0x69   : > { %p1405_p1 = pnand %p1403_p0, %p1389_p2  ;;  %p1411_p6 = scmp.lt.s32.totalorder %s1409_s25, %s1402_s17 }
  0x6b   : > { %p1406_p9 = pneg %p1405_p1  ;;  %p1412_p10 = por %p1411_p6, %p1410_p4 }
  0x6d   : > { %p1413_p3 = pnand %p1412_p10, %p1406_p9 }
  0x6f   : > { %1416 = shalt.err (!%p1413_p3)
}
  0x70   : > { %1233 = dma.hbm_to_vmem [thread:$0]  (!%p1747_p11), %s1742_s20, 64, %s1751_s11, %s255_s19  }
  0x71   : > { %s273_s2 = sand.u32 1, %s1541_s26   ;;  %s277_s14 = scalar_lea.vmem [#allocation5], %s1733_s12 }
  0x72   : > { %s284_s8 = sshll.u32 %s277_s14, 4  ;;  %s274_s15 = scalar_lea.sflag [#allocation6], %s273_s2  ;;  %s285_s8 = int_to_ptr.vmem [resolvable:$true] %s284_s8 }
  0x73   : > { %s1417_s16 = scalar_lea.hbm %s1756_s18, 64  ;;  %s1422_s3 = scalar_lea.hbm %s1959_s1, 128 }
  0x74   : > { %p1418_p4 = scmp.ne.s32.totalorder %s1756_s18, %s1417_s16  ;;  %p1423_p5 = scmp.lt.u32.totalorder %s1756_s18, %s1959_s1 }
  0x75   : > { %p1424_p7 = scmp.lt.u32.totalorder %s1422_s3, %s1417_s16  ;;  %p1426_p0 = scmp.lt.u32.totalorder %s1417_s16, %s1756_s18 }
  0x76   : > { %p1420_p9 = pnand %p1418_p4, %p1389_p2 }
  0x77   : > { %p1425_p12 = por %p1424_p7, %p1423_p5 }
  0x78   : > { %p1421_p13 = pneg %p1420_p9 }
  0x79   : > { %p1427_p1 = por %p1426_p0, %p1425_p12 }
  0x7b   : > { %p1428_p6 = pnand %p1427_p1, %p1421_p13 }
  0x7d   : > { %1431 = shalt.err (!%p1428_p6)
}
  0x7e   : > { %s1432_s12 = scalar_lea.vmem %s285_s8, 64  ;;  %s1548_s20 = smov [#allocation5]  }
  0x7f   : > { %p1433_p10 = scmp.ne.s32.totalorder %s285_s8, %s1432_s12  ;;  %s1437_s11 = sshll.u32 %s1548_s20, 4  ;;  %s1438_s11 = int_to_ptr.vmem [resolvable:$false] %s1437_s11 }
  0x80   : > { %s1439_s19 = scalar_lea.vmem %s1438_s11, 128  ;;  %p1440_p9 = scmp.lt.s32.totalorder %s285_s8, %s1438_s11 }
  0x81   : > { %p1435_p3 = pnand %p1433_p10, %p1389_p2  ;;  %p1441_p8 = scmp.lt.s32.totalorder %s1439_s19, %s1432_s12 }
  0x83   : > { %p1436_p4 = pneg %p1435_p3  ;;  %p1442_p5 = por %p1441_p8, %p1440_p9 }
  0x85   : > { %p1443_p7 = pnand %p1442_p5, %p1436_p4 }
  0x87   : > { %1446 = shalt.err (!%p1443_p7)
}
  0x88   : > { %1236 = dma.hbm_to_vmem [thread:$0]  (!%p1747_p11), %s1756_s18, 64, %s285_s8, %s274_s15  }
  0x89   : > { %p1985_p13 = scmp.ne.s32.totalorder %s1976_s7, 0 }
  0x8a   : > { %s1807_s2 = sand.u32 (!%p1985_p13), 1, %s1525_s22   ;;  %p1986_p2 = scmp.ne.s32.totalorder (!%p1985_p13), %s1974_s29, 0 }
  0x8b   : > { %293 = sbr.rel (%p1985_p13) target bundleno = 1402 (0x57a), region = 44  ;;  %s1098_s14 = sshll.u32 (!%p1985_p13), %s1807_s2, 2 }
  0x8c   : > { %s296_s16 = scalar_lea.sflag (!%p1985_p13), [#allocation3], %s1807_s2  ;;  %s299_s9 = scalar_lea.vmem (!%p1985_p13), [#allocation2], %s1098_s14 }
  0x92   : > { %1500 = dma.done.wait (%p1986_p2), %s296_s16, 64  }
  0x93   : > { %1502 = vsyncadd (%p1986_p2), %s296_s16, 4294967232  ;;  %s304_s13 = sand.u32 1, %s1628_s27   ;;  %s308_s7 = scalar_lea.vmem [#allocation5], %s1098_s14 }
  0x94   : > { %s305_s18 = scalar_lea.sflag [#allocation6], %s304_s13 }
  0x95   : > { %1504 = dma.done.wait (%p1986_p2), %s305_s18, 64  }
  0x96   : > { %1506 = vsyncadd (%p1986_p2), %s305_s18, 4294967232  ;;  %p1987_p8 = scmp.eq.s32.totalorder %s1628_s27, 0 }
  0x98   : > { %1508 = dma.done.wait (%p1987_p8), [#allocation6], 256   ;;  %p1988_p11 = pmov %p1987_p8 }
  0x99   : > { %p1989_p12 = pmov %p1987_p8 }
  0x9a   : > { %1510 = vsyncadd (%p1988_p11), [#allocation6], 4294967040 }
  0x9b   : > { %1512 = dma.done.wait (%p1989_p12), [#allocation9], 256   ;;  %p1990_p0 = pmov %p1987_p8 }
  0x9c   : > { %v1549_v0 = vmov 0.0   ;;  %vm1550_vm0 = vmmov 0   ;;  %v1311_v1 = vld [vmem:[#allocation8] sm:$0xff]   ;;  %v1312_v2 = vld [vmem:[#allocation7] sm:$0xff]   ;;  %v1313_v3 = vld [vmem:[#allocation8 + $0x8] sm:$0xff]   ;;  %vm375_vm1 = vcmask 261120  }
  0x9d   : > { %1514 = vsyncadd (%p1990_p0), [#allocation9], 4294967040  ;;  %1153 = vmatprep.subr.bf16.mxu1 %v1549_v0  ;;  %1145 = vmatprep.subr.bf16.mxu0 %v1549_v0  ;;  %v1314_v4 = vld [vmem:[#allocation7 + $0x8] sm:$0xff]   ;;  %v419_v5 = vld [vmem:[%s308_s7] sm:$0xf]  ;;  %vm488_vm2 = vcmask 64512  }
  0x9e   : > { %1157 = vmatprep.mubr.msk.bf16.mxu1 %vm1550_vm0, %v1549_v0  ;;  %1149 = vmatprep.mubr.msk.bf16.mxu0 %vm1550_vm0, %v1549_v0  ;;  %v351_v6 = vld [vmem:[%s299_s9] sm:$0xf]  ;;  %s1551_s17 = smov 112   ;;  %s1552_s3 = smov 120   ;;  %vm554_vm3 = vcmask 1043456   ;;  %vm945_vm4 = vcmask 130048  }
  0x9f   : > { %1154 = vmatpush3.bf16.msra.mxu1 %v1311_v1  ;;  %1146 = vmatpush3.bf16.msra.mxu0 %v1312_v2  ;;  %v1107_v7 = vld [vmem:[%s1963_s5] ss:$0 sm:$0xff]  ;;  %s1553_s28 = smov 104   ;;  %s1554_s25 = smov 96   ;;  %vm947_vm5 = vcmask 195584  }
  0xa0   : > { %1155 = vmatprep.subr.bf16.mxu1 %v1549_v0  ;;  %1147 = vmatprep.subr.bf16.mxu0 %v1549_v0  ;;  %v1103_v8 = vld [vmem:[%s1962_s4] ss:$0 sm:$0xff]  ;;  %s1555_s12 = smov 80   ;;  %s1556_s20 = smov 72  }
  0xa1   : > { %s1557_s11 = smov 88   ;;  %s1558_s19 = smov 8  }
  0xa2   : > { %s1559_s14 = smov 16   ;;  %s1560_s16 = smov 24  }
  0xa3   : > { %1156 = vmatpush3.bf16.msra.mxu1 %v1313_v3  ;;  %1148 = vmatpush3.bf16.msra.mxu0 %v1314_v4  ;;  %s1102_s9 = sshll.u32 %s1807_s2, 3  ;;  %s1120_s13 = sshll.u32 %s1533_s24, 7 }
  0xa4   : > { %1167 = vmatprep.subr.bf16.mxu1 %v1549_v0  ;;  %1161 = vmatprep.subr.bf16.mxu0 %v1549_v0  ;;  %s349_s18 = scalar_lea.vmem [#allocation10], %s1102_s9  ;;  %s1908_s8 = scalar_lea.hbm %s1964_s6, %s1120_s13 }
  0xa5   : > { %s965_s7 = sshll.u32 %s349_s18, 4  ;;  %s951_s24 = scalar_lea.sflag [#allocation4], %s1807_s2  ;;  %s1910_s7 = int_to_ptr.vmem [resolvable:$true] %s965_s7 }
  0xa6   : > { %1158 = vmatmul.mubr.msk.bf16.vlgmr.msra.gmra.mrb[0].mxu1 %vm375_vm1, %v419_v5  ;;  %1150 = vmatmul.mubr.msk.bf16.vlgmr.msra.gmra.mrb[0].mxu0 %vm375_vm1, %v351_v6  ;;  %s1447_s15 = scalar_lea.vmem %s1910_s7, 128  ;;  %p1991_p6 = scmp.ne.s32.totalorder %s1982_s10, 0 }
  0xa7   : > { %1169 = vmatprep.mubr.msk.bf16.mxu1 %vm1550_vm0, %v1549_v0  ;;  %1163 = vmatprep.mubr.msk.bf16.mxu0 %vm1550_vm0, %v1549_v0  ;;  %p1448_p1 = scmp.ne.s32.totalorder %s1910_s7, %s1447_s15 }
  0xa9   : > { %p1449_p10 = pnand %p1448_p1, %p1991_p6 }
  0xab   : > { %p1450_p3 = pneg %p1449_p10 }
 0x179   : > { %v480_v9 = vpop.f32.mrb[0].mxu1  ;;  %v413_v12 = vpop.f32.mrb[0].mxu0 }
 0x17a   : > { %v481_v10 = vadd.f32 %v1107_v7, %v480_v9  ;;  %v1159_v11 = vpop.f32.mrb[1].mxu1  ;;  %v414_v14 = vadd.f32 %v1103_v8, %v413_v12  ;;  %v1151_v15 = vpop.f32.mrb[1].mxu0 }
 0x17b   : > { %v483_v13 = vpop.f32.mrb[2].mxu1  ;;  %v416_v18 = vpop.f32.mrb[2].mxu0 }
 0x17c   : > { %v1850_v16 = vpack.c.bf16 %v481_v10, %v481_v10  ;;  %v1160_v17 = vpop.f32.mrb[3].mxu1  ;;  %v1152_v19 = vpop.f32.mrb[3].mxu0  ;;  %v486_v20 = vpack.c.bf16 %v414_v14, %v414_v14 }
 0x17e   : > { %712 = vrot.lane.b32.xlu1 %v1850_v16, %s1551_s17  ;;  %601 = vrot.lane.b32.xlu0 %v1850_v16, %s1552_s3  ;;  %v493_v21 = vsel %vm488_vm2, %v1850_v16, 0 }
 0x17f   : > { %1162 = vmatpush3.bf16.xpose.msra.mxu0 %v493_v21 }
 0x180   : > { %1173 = vmatprep.subr.bf16.mxu0 %v1549_v0 }
 0x182   : > { %710 = vrot.lane.b32.xlu1 %v486_v20, %s1551_s17  ;;  %599 = vrot.lane.b32.xlu0 %v486_v20, %s1552_s3  ;;  %s1561_s17 = smov [#allocation10]  }
 0x183   : > { %s1451_s3 = sshll.u32 %s1561_s17, 4  ;;  %s1452_s3 = int_to_ptr.vmem [resolvable:$false] %s1451_s3 }
 0x184   : > { %p1454_p4 = scmp.lt.s32.totalorder %s1910_s7, %s1452_s3 }
 0x186   : > { %821 = vrot.lane.b32.xlu1 %v486_v20, %s1553_s28  ;;  %823 = vrot.lane.b32.xlu0 %v1850_v16, %s1553_s28  ;;  %s1453_s28 = scalar_lea.vmem %s1452_s3, 256 }
 0x187   : > { %1164 = vmatmul.mubr.msk.bf16.vlgmr.msra.gmra.mrb[4].mxu0 %vm488_vm2, %v486_v20  ;;  %p1455_p9 = scmp.lt.s32.totalorder %s1453_s28, %s1447_s15 }
 0x188   : > { %1175 = vmatprep.mubr.msk.bf16.mxu0 %vm1550_vm0, %v1549_v0 }
 0x189   : > { %p1456_p5 = por %p1455_p9, %p1454_p4 }
 0x18b   : > { %p1457_p7 = pnand %p1456_p5, %p1450_p3 }
 0x1f0   : > { %v602_v22 = vpop.permute.xlu0 %601  ;;  %v713_v24 = vpop.permute.xlu1 %712 }
 0x1f1   : > { %v607_v23 = vsel %vm488_vm2, %v602_v22, 0  ;;  %v718_v26 = vsel %vm488_vm2, %v713_v24, 0 }
 0x1f2   : > { %1174 = vmatpush3.bf16.xpose.msra.mxu0 %v607_v23 }
 0x1f3   : > { %1185 = vmatprep.subr.bf16.mxu0 %v1549_v0 }
 0x1f4   : > { %v600_v25 = vpop.permute.xlu0 %599  ;;  %v711_v28 = vpop.permute.xlu1 %710 }
 0x1f8   : > { %v824_v27 = vpop.permute.xlu0 %823  ;;  %v822_v30 = vpop.permute.xlu1 %821 }
 0x1f9   : > { %1176 = vmatmul.mubr.msk.bf16.vlgmr.msra.gmra.mrb[8].mxu0 %vm488_vm2, %v600_v25  ;;  %v829_v29 = vsel %vm488_vm2, %v824_v27, 0 }
 0x1fa   : > { %1186 = vmatpush3.bf16.xpose.msra.mxu0 %v718_v26  ;;  %1187 = vmatprep.mubr.msk.bf16.mxu0 %vm1550_vm0, %v1549_v0 }
 0x1fb   : > { %1197 = vmatprep.subr.bf16.mxu0 %v1549_v0 }
 0x201   : > { %1188 = vmatmul.mubr.msk.bf16.vlgmr.msra.gmra.mrb[12].mxu0 %vm488_vm2, %v711_v28 }
 0x202   : > { %1198 = vmatpush3.bf16.xpose.msra.mxu0 %v829_v29  ;;  %1199 = vmatprep.mubr.msk.bf16.mxu0 %vm1550_vm0, %v1549_v0 }
 0x209   : > { %1200 = vmatmul.mubr.msk.bf16.vlgmr.msra.gmra.mrb[16].mxu0 %vm488_vm2, %v822_v30 }
 0x25a   : > { %v529_v31 = vpop.f32.mrb[4].mxu0 }
 0x25b   : > { %v535_v32 = vmul.f32 0.35355338, %v529_v31  ;;  %v1165_v33 = vpop.f32.mrb[5].mxu0 }
 0x25c   : > { %v532_v34 = vpop.f32.mrb[6].mxu0 }
 0x25d   : > { %v1166_v35 = vpop.f32.mrb[7].mxu0  ;;  %v536_v36 = vsel %vm488_vm2, %v535_v32, -inf }
 0x25e   : > { %537 = vmax.xlane.f32.xlu0 %v536_v36 }
 0x2cc   : > { %v643_v37 = vpop.f32.mrb[8].mxu0 }
 0x2cd   : > { %v649_v38 = vmul.f32 0.35355338, %v643_v37  ;;  %v1177_v39 = vpop.f32.mrb[9].mxu0 }
 0x2ce   : > { %v646_v40 = vpop.f32.mrb[10].mxu0 }
 0x2cf   : > { %v1178_v41 = vpop.f32.mrb[11].mxu0  ;;  %v650_v42 = vsel %vm488_vm2, %v649_v38, -inf }
 0x2d0   : > { %651 = vmax.xlane.f32.xlu1 %v650_v42 }
 0x2d4   : > { %v754_v43 = vpop.f32.mrb[12].mxu0 }
 0x2d5   : > { %v760_v44 = vmul.f32 0.35355338, %v754_v43  ;;  %v1189_v45 = vpop.f32.mrb[13].mxu0 }
 0x2d6   : > { %v757_v46 = vpop.f32.mrb[14].mxu0 }
 0x2d7   : > { %v1190_v47 = vpop.f32.mrb[15].mxu0  ;;  %v761_v48 = vsel %vm488_vm2, %v760_v44, -inf }
 0x2d8   : > { %762 = vmax.xlane.f32.xlu0 %v761_v48 }
 0x2dc   : > { %v865_v49 = vpop.f32.mrb[16].mxu0 }
 0x2dd   : > { %v871_v50 = vmul.f32 0.35355338, %v865_v49  ;;  %v1201_v51 = vpop.f32.mrb[17].mxu0 }
 0x2de   : > { %v868_v52 = vpop.f32.mrb[18].mxu0 }
 0x2df   : > { %v1202_v53 = vpop.f32.mrb[19].mxu0  ;;  %v872_v54 = vsel %vm488_vm2, %v871_v50, -inf }
 0x2e0   : > { %873 = vmax.xlane.f32.xlu0 %v872_v54 }
 0x2eb   : > { %v538_v55 = vpop.xlane.xlu0 %537 }
 0x2ec   : > { %v539_v56 = vsub.f32 %v535_v32, %v538_v55 }
 0x2ee   : > { %v540_v57 = vmul.f32 1.442695, %v539_v56 }
 0x2f0   : > { %1315 = vpow2.f32 %v540_v57 }
 0x2fa   : > { %v1316_v58 = vpop.eup %1315 }
 0x2fb   : > { %v542_v59 = vsel %vm488_vm2, %v1316_v58, 0.0 }
 0x2fc   : > { %543 = vadd.xlane.f32.xlu1 %v542_v59 }
 0x30d   : > { %549 = vrot.lane.b32.xlu1 %v1850_v16, %s1554_s25 }
 0x35d   : > { %v652_v60 = vpop.xlane.xlu1 %651 }
 0x35e   : > { %v653_v61 = vsub.f32 %v649_v38, %v652_v60 }
 0x360   : > { %v654_v62 = vmul.f32 1.442695, %v653_v61 }
 0x362   : > { %1317 = vpow2.f32 %v654_v62 }
 0x365   : > { %v763_v63 = vpop.xlane.xlu0 %762 }
 0x366   : > { %v764_v1 = vsub.f32 %v760_v44, %v763_v63 }
 0x368   : > { %v765_v2 = vmul.f32 1.442695, %v764_v1 }
 0x36a   : > { %1319 = vpow2.f32 %v765_v2 }
 0x36c   : > { %v1318_v3 = vpop.eup %1317 }
 0x36d   : > { %v874_v4 = vpop.xlane.xlu0 %873  ;;  %v656_v5 = vsel %vm488_vm2, %v1318_v3, 0.0 }
 0x36e   : > { %v875_v6 = vsub.f32 %v871_v50, %v874_v4  ;;  %657 = vadd.xlane.f32.xlu0 %v656_v5 }
 0x370   : > { %v876_v7 = vmul.f32 1.442695, %v875_v6 }
 0x372   : > { %1321 = vpow2.f32 %v876_v7 }
 0x374   : > { %v1320_v8 = vpop.eup %1319 }
 0x375   : > { %v767_v9 = vsel %vm488_vm2, %v1320_v8, 0.0 }
 0x376   : > { %768 = vadd.xlane.f32.xlu1 %v767_v9 }
 0x37c   : > { %v1322_v10 = vpop.eup %1321 }
 0x37d   : > { %v878_v11 = vsel %vm488_vm2, %v1322_v10, 0.0 }
 0x37e   : > { %879 = vadd.xlane.f32.xlu0 %v878_v11 }
 0x387   : > { %773 = vrot.lane.b32.xlu1 %v1850_v16, %s1555_s12 }
 0x389   : > { %v544_v12 = vpop.xlane.xlu1 %543 }
 0x38a   : > { %1323 = vrcp.f32 %v544_v12 }
 0x38b   : > { %884 = vrot.lane.b32.xlu1 %v1850_v16, %s1556_s20 }
 0x38d   : > { %v550_v13 = vpop.permute.xlu1 %549 }
 0x38e   : > { %v556_v14 = vsel %vm554_vm3, %v550_v13, 0 }
 0x38f   : > { %1168 = vmatpush3.bf16.msra.mxu1 %v556_v14 }
 0x390   : > { %1179 = vmatprep.subr.bf16.mxu1 %v1549_v0 }
 0x394   : > { %v1324_v15 = vpop.eup %1323  ;;  %662 = vrot.lane.b32.xlu0 %v1850_v16, %s1557_s11 }
 0x395   : > { %v546_v17 = vmul.f32 %v1324_v15, %v1316_v58 }
 0x397   : > { %v547_v18 = vpack.c.bf16 %v546_v17, %v546_v17 }
 0x399   : > { %1170 = vmatmul.mubr.msk.bf16.vlgmr.msra.gmra.mrb[4].mxu1 %vm488_vm2, %v547_v18 }
 0x39a   : > { %1181 = vmatprep.mubr.msk.bf16.mxu1 %vm1550_vm0, %v1549_v0 }
 0x3fb   : > { %v658_v19 = vpop.xlane.xlu0 %657 }
 0x3fc   : > { %1325 = vrcp.f32 %v658_v19 }
 0x403   : > { %v769_v20 = vpop.xlane.xlu1 %768 }
 0x404   : > { %1327 = vrcp.f32 %v769_v20 }
 0x406   : > { %v1326_v21 = vpop.eup %1325 }
 0x407   : > { %v660_v23 = vmul.f32 %v1326_v21, %v1318_v3  ;;  %v774_v26 = vpop.permute.xlu1 %773 }
 0x408   : > { %v779_v28 = vsel %vm554_vm3, %v774_v26, 0 }
 0x409   : > { %v661_v16 = vpack.c.bf16 %v660_v23, %v660_v23 }
 0x40b   : > { %v880_v22 = vpop.xlane.xlu0 %879  ;;  %v885_v30 = vpop.permute.xlu1 %884 }
 0x40c   : > { %1329 = vrcp.f32 %v880_v22  ;;  %v890_v33 = vsel %vm554_vm3, %v885_v30, 0 }
 0x40e   : > { %v1328_v27 = vpop.eup %1327 }
 0x40f   : > { %v663_v24 = vpop.permute.xlu0 %662  ;;  %v771_v29 = vmul.f32 %v1328_v27, %v1320_v8 }
 0x410   : > { %v668_v25 = vsel %vm554_vm3, %v663_v24, 0 }
 0x411   : > { %1180 = vmatpush3.bf16.msra.mxu1 %v668_v25  ;;  %v772_v31 = vpack.c.bf16 %v771_v29, %v771_v29 }
 0x412   : > { %1191 = vmatprep.subr.bf16.mxu1 %v1549_v0 }
 0x414   : > { %1182 = vmatmul.mubr.msk.bf16.vlgmr.msra.gmra.mrb[8].mxu1 %vm488_vm2, %v661_v16 }
 0x415   : > { %1192 = vmatpush3.bf16.msra.mxu1 %v779_v28  ;;  %1193 = vmatprep.mubr.msk.bf16.mxu1 %vm1550_vm0, %v1549_v0 }
 0x416   : > { %1203 = vmatprep.subr.bf16.mxu1 %v1549_v0  ;;  %v1330_v32 = vpop.eup %1329 }
 0x417   : > { %v882_v34 = vmul.f32 %v1330_v32, %v1322_v10 }
 0x419   : > { %v883_v35 = vpack.c.bf16 %v882_v34, %v882_v34 }
 0x41c   : > { %1194 = vmatmul.mubr.msk.bf16.vlgmr.msra.gmra.mrb[12].mxu1 %vm488_vm2, %v772_v31 }
 0x41d   : > { %1204 = vmatpush3.bf16.msra.mxu1 %v890_v33  ;;  %1205 = vmatprep.mubr.msk.bf16.mxu1 %vm1550_vm0, %v1549_v0 }
 0x424   : > { %1206 = vmatmul.mubr.msk.bf16.vlgmr.msra.gmra.mrb[16].mxu1 %vm488_vm2, %v883_v35 }
 0x46c   : > { %v592_v36 = vpop.f32.mrb[4].mxu1 }
 0x46d   : > { %v1171_v37 = vpop.f32.mrb[5].mxu1 }
 0x46e   : > { %v595_v38 = vpop.f32.mrb[6].mxu1 }
 0x46f   : > { %v1172_v39 = vpop.f32.mrb[7].mxu1 }
 0x4e7   : > { %v704_v40 = vpop.f32.mrb[8].mxu1 }
 0x4e8   : > { %933 = vrot.lane.b32.xlu0 %v704_v40, %s1558_s19  ;;  %v1183_v41 = vpop.f32.mrb[9].mxu1 }
 0x4e9   : > { %v707_v42 = vpop.f32.mrb[10].mxu1 }
 0x4ea   : > { %v1184_v43 = vpop.f32.mrb[11].mxu1 }
 0x4ef   : > { %v815_v44 = vpop.f32.mrb[12].mxu1 }
 0x4f0   : > { %937 = vrot.lane.b32.xlu1 %v815_v44, %s1559_s14  ;;  %v1195_v0 = vpop.f32.mrb[13].mxu1 }
 0x4f1   : > { %v818_v45 = vpop.f32.mrb[14].mxu1 }
 0x4f2   : > { %v1196_v46 = vpop.f32.mrb[15].mxu1 }
 0x4f7   : > { %v926_v47 = vpop.f32.mrb[16].mxu1 }
 0x4f8   : > { %941 = vrot.lane.b32.xlu0 %v926_v47, %s1560_s16  ;;  %v1207_v48 = vpop.f32.mrb[17].mxu1 }
 0x4f9   : > { %v929_v49 = vpop.f32.mrb[18].mxu1 }
 0x4fa   : > { %v1208_v50 = vpop.f32.mrb[19].mxu1 }
 0x55a   : > { %v934_v51 = vpop.permute.xlu0 %933 }
 0x55b   : > { %v944_v53 = vsel %vm488_vm2, %v592_v36, %v934_v51 }
 0x562   : > { %v938_v52 = vpop.permute.xlu1 %937 }
 0x563   : > { %v946_v54 = vsel %vm945_vm4, %v944_v53, %v938_v52 }
 0x56a   : > { %v942_v55 = vpop.permute.xlu0 %941 }
 0x56b   : > { %v948_v56 = vsel %vm947_vm5, %v946_v54, %v942_v55 }
 0x56c   : > { %949 = vst.msk [vmem:[%s349_s18] sm:$0xff] %vm375_vm1, %v948_v56 }
 0x56d   : > { %1460 = shalt.err (!%p1457_p7)
}
 0x56e   : > { %s1461_s2 = scalar_lea.hbm %s1908_s8, 128  ;;  %s1465_s20 = scalar_lea.hbm %s1964_s6, 256 }
 0x56f   : > { %p1462_p13 = scmp.ne.s32.totalorder %s1908_s8, %s1461_s2  ;;  %p1466_p11 = scmp.lt.u32.totalorder %s1908_s8, %s1964_s6 }
 0x570   : > { %p1467_p12 = scmp.lt.u32.totalorder %s1465_s20, %s1461_s2  ;;  %p1469_p1 = scmp.lt.u32.totalorder %s1461_s2, %s1908_s8 }
 0x571   : > { %p1463_p2 = pnand %p1462_p13, %p1991_p6 }
 0x572   : > { %p1468_p0 = por %p1467_p12, %p1466_p11 }
 0x573   : > { %p1464_p8 = pneg %p1463_p2 }
 0x574   : > { %p1470_p10 = por %p1469_p1, %p1468_p0 }
 0x576   : > { %p1471_p3 = pnand %p1470_p10, %p1464_p8 }
 0x578   : > { %1474 = shalt.err (!%p1471_p3)
}
 0x579   : > { %1221 = dma.vmem_to_hbm [thread:$0]  (%p1991_p6), %s1910_s7, 128, %s1908_s8, %s951_s24  }
 0x57a PF: > { %s977_s14 = sand.u32 1, %s1521_s21   ;;  %p1992_p4 = scmp.ne.s32.totalorder %s1975_s30, 0 }
 0x57b   : > { %p1993_p9 = scmp.ge.s32.totalorder %s1541_s26, 2  ;;  %s978_s16 = scalar_lea.sflag [#allocation4], %s977_s14 }
 0x57d   : > { %p1238_p5 = pnand %p1993_p9, %p1992_p4 }
 0x57f   : > { %1516 = dma.done.wait (!%p1238_p5), %s978_s16, 128  }
 0x580   : > { %1518 = vsyncadd (!%p1238_p5), %s978_s16, 4294967168  ;;  %s26_s26 = sadd.s32 1, %s1541_s26   ;;  %s1994_s10 = sld [smem:[#allocation18_spill]] }
 0x581   : > { %p23_p7 = scmp.ge.s32.totalorder %s26_s26, 4   ;;  %s1995_s24 = sld [smem:[#allocation16_spill]] }
 0x582   : > { %s1996_s25 = sld [smem:[#allocation17_spill]]  ;;  %s1997_s21 = smov %s1525_s22 }
 0x583   : > { %s1998_s22 = smov %s1529_s23  ;;  %25 = sbr.rel (!%p23_p7) target bundleno = 12 (0xc), region = 110 }
 0x586   : > { %s1999_s23 = smov %s1994_s10 }
 0x58a   :  { %983 = vsyncpa [#allocation3], 1 }
 0x58b   :  { %985 = vsyncpa [#allocation3 + $0x1], 1 }
 0x58c   :  { %986 = vsyncpa [#allocation6], 1 }
 0x58d   :  { %988 = vsyncpa [#allocation6 + $0x1], 1 }
 0x58e   :  { %989 = vsyncpa [#allocation9], 1 }
 0x58f   :  { %990 = vsyncpa [#allocation4], 1 }
 0x590   :  { %992 = vsyncpa [#allocation4 + $0x1], 1 }

</bundles_post_ra>
